<compile_context>
chip_gen: v7x
topology: tpu7x:2x2x1
jax: 0.10.0
libtpu: 0.0.40
codegen_flags: <defaults>
</compile_context>

<pallas_src>
import functools

import jax
import jax.numpy as jnp
from jax.experimental import pallas as pl
from jax.experimental.pallas import tpu as pltpu

LANE = 128      # lane width: last block dim must be a multiple (or full array)
SUBLANE = 8     # f32 sublane packing for the second-to-last block dim

_DEFAULT_SCOPED_VMEM = 32 * 1024 * 1024   # conservative scoped-VMEM default (v7x)
_MIN_SPLIT_ROWS = 64                      # min rows per TC before splitting (v7x)


def _round_up(n, m):
    return ((n + m - 1) // m) * m


def _cdiv(a, b):
    return -(-a // b)


def _mlp_kernel(x_ref, w1_ref, b1_ref, w2_ref, b2_ref, w3_ref, b3_ref, o_ref):
    """(TILE_B, in_size) batch tile -> fc1+ReLU -> fc2+ReLU -> fc3 -> (TILE_B, out)."""
    mm_dtype = w1_ref.dtype                      # MXU input dtype (bf16 or f32)
    x = x_ref[...].astype(mm_dtype)              # cast in vregs, not in the wrapper

    # fc1 + ReLU  (f32 accumulation, f32 elementwise)
    h1 = jnp.dot(x, w1_ref[...], preferred_element_type=jnp.float32)
    h1 = jnp.maximum(h1 + b1_ref[...], 0.0)

    # fc2 + ReLU
    h2 = jnp.dot(h1.astype(mm_dtype), w2_ref[...], preferred_element_type=jnp.float32)
    h2 = jnp.maximum(h2 + b2_ref[...], 0.0)

    # fc3 (no activation) — store at logical output width
    out = jnp.dot(h2.astype(mm_dtype), w3_ref[...], preferred_element_type=jnp.float32)
    o_ref[...] = (out + b3_ref[...]).astype(o_ref.dtype)


def init_params(key, input_size, hidden_size, output_size,
                matmul_dtype=jnp.bfloat16):
    """nn.Linear-style init.  Weights are stored transposed (in, out):
       w1: (input_size, hid_p)   -- logical input rows, hidden cols padded to 128
       w2: (hid_p, hid_p)
       w3: (hid_p, output_size)  -- logical output cols (small HBM output stream)
    All padding entries are exactly zero, so logical results are unchanged."""
    hid_p = _round_up(hidden_size, LANE)
    ks = jax.random.split(key, 6)

    def uniform(k, shape, fan_in):
        bound = 1.0 / (fan_in ** 0.5)
        return jax.random.uniform(k, shape, jnp.float32, -bound, bound)

    w1 = jnp.zeros((input_size, hid_p), jnp.float32).at[:, :hidden_size].set(
        uniform(ks[0], (input_size, hidden_size), input_size))
    b1 = jnp.zeros((1, hid_p), jnp.float32).at[:, :hidden_size].set(
        uniform(ks[1], (1, hidden_size), input_size))
    w2 = jnp.zeros((hid_p, hid_p), jnp.float32).at[:hidden_size, :hidden_size].set(
        uniform(ks[2], (hidden_size, hidden_size), hidden_size))
    b2 = jnp.zeros((1, hid_p), jnp.float32).at[:, :hidden_size].set(
        uniform(ks[3], (1, hidden_size), hidden_size))
    w3 = jnp.zeros((hid_p, output_size), jnp.float32).at[:hidden_size, :].set(
        uniform(ks[4], (hidden_size, output_size), hidden_size))
    b3 = uniform(ks[5], (1, output_size), hidden_size)

    # Weights feed the MXU -> matmul dtype; biases stay f32 (VPU path).
    return {"w1": w1.astype(matmul_dtype), "b1": b1,
            "w2": w2.astype(matmul_dtype), "b2": b2,
            "w3": w3.astype(matmul_dtype), "b3": b3}


def _choose_batch_tiling(batch, max_tile_b):
    """Pick (tile_b, b_pad).  tile_b is a multiple of 8 (the (8,128) block
    constraint), padding never overshoots by ~a full tile, and batches with
    enough rows are split into >=2 grid steps so v7x can shard the 'parallel'
    axis across both TensorCores."""
    max_tile_b = max(SUBLANE, (max_tile_b // SUBLANE) * SUBLANE)
    b8 = _round_up(batch, SUBLANE)
    num_tiles = _cdiv(b8, max_tile_b)
    if num_tiles == 1 and b8 >= 2 * _MIN_SPLIT_ROWS:
        num_tiles = 2                      # give v7x's second TC work
    tile_b = _round_up(_cdiv(b8, num_tiles), SUBLANE)
    return tile_b, num_tiles * tile_b


@functools.partial(jax.jit, static_argnames=("max_tile_b", "weight_buffers"))
def poker_agent_forward(x, params, *, max_tile_b=1024, weight_buffers=1):
    """y = fc3(relu(fc2(relu(fc1(x))))) for x of shape (B, input_size), f32."""
    w1, b1 = params["w1"], params["b1"]
    w2, b2 = params["w2"], params["b2"]
    w3, b3 = params["w3"], params["b3"]

    B, in_size = x.shape
    hid_p = w1.shape[1]
    out_cols = w3.shape[1]          # logical output_size

    tile_b, b_pad = _choose_batch_tiling(B, max_tile_b)
    grid = (b_pad // tile_b,)

    # Only the batch axis is ever padded; x stays f32 / unpadded in the lane
    # dim — no wrapper-side pad+cast HBM round trip.
    x_in = x if b_pad == B else jnp.pad(x, ((0, b_pad - B), (0, 0)))

    def resident(shape):
        # Constant index_map: DMA'd once, stays resident in VMEM across steps.
        # Single-buffered: no point holding two copies of static weights.
        if weight_buffers is None:
            return pl.BlockSpec(shape, lambda i: (0, 0))
        return pl.BlockSpec(shape, lambda i: (0, 0),
                            pipeline_mode=pl.Buffered(weight_buffers))

    # VMEM budget (bytes) from static shapes; only raise the scoped limit when
    # a big config needs it (keeps the default, safe setting for small models).
    mm_bytes = jnp.dtype(w1.dtype).itemsize
    wb = weight_buffers if weight_buffers else 2
    est = ((in_size * hid_p + hid_p * hid_p + hid_p * out_cols) * mm_bytes * wb
           + (2 * hid_p + out_cols) * 4 * wb
           + 2 * tile_b * (in_size + out_cols) * 4     # double-buffered x / out tiles
           + 2 * tile_b * hid_p * 4)                   # live f32 h1 / h2
    vmem_limit = None
    if 2 * est > _DEFAULT_SCOPED_VMEM:
        vmem_limit = min(2 * est, 100 * 1024 * 1024)

    out = pl.pallas_call(
        _mlp_kernel,
        out_shape=jax.ShapeDtypeStruct((b_pad, out_cols), jnp.float32),
        grid=grid,
        in_specs=[
            pl.BlockSpec((tile_b, in_size), lambda i: (i, 0)),    # x: streamed over batch
            resident((in_size, hid_p)), resident((1, hid_p)),     # fc1
            resident((hid_p, hid_p)), resident((1, hid_p)),       # fc2
            resident((hid_p, out_cols)), resident((1, out_cols)), # fc3
        ],
        out_specs=pl.BlockSpec((tile_b, out_cols), lambda i: (i, 0)),  # logical-width store
        compiler_params=pltpu.CompilerParams(
            dimension_semantics=("parallel",),   # v7x: shard batch over both TCs
            vmem_limit_bytes=vmem_limit,
        ),
    )(x_in, w1, b1, w2, b2, w3, b3)

    # Strip batch padding only (no lane padding left to strip).
    return out if b_pad == B else out[:B]


# Resident-weight pipeline depth: 1 = single VMEM copy (review recommendation).
# If this Pallas version rejects Buffered(1), _run_forward falls back once to
# the default double-buffered pipeline so the script still runs cleanly.
_WEIGHT_BUFFERS = 1


def _run_forward(x, params):
    global _WEIGHT_BUFFERS
    try:
        out = poker_agent_forward(x, params, weight_buffers=_WEIGHT_BUFFERS)
        jax.block_until_ready(out)
        return out
    except Exception:
        if _WEIGHT_BUFFERS is None:
            raise
        _WEIGHT_BUFFERS = None  # fall back to the default pipeline depth
        out = poker_agent_forward(x, params, weight_buffers=None)
        jax.block_until_ready(out)
        return out


def _reference(x, p, hidden_size):
    """Pure-JAX f32 reference on the logical (un-padded) weights."""
    w1 = p["w1"][:, :hidden_size].astype(jnp.float32)
    b1 = p["b1"][:, :hidden_size]
    w2 = p["w2"][:hidden_size, :hidden_size].astype(jnp.float32)
    b2 = p["b2"][:, :hidden_size]
    w3 = p["w3"][:hidden_size, :].astype(jnp.float32)
    b3 = p["b3"]
    h = jnp.maximum(x @ w1 + b1, 0.0)
    h = jnp.maximum(h @ w2 + b2, 0.0)
    return h @ w3 + b3


if __name__ == "__main__":
    input_size, hidden_size, output_size = 16, 32, 4
    batch = 8

    key = jax.random.PRNGKey(0)
    k_x, k_p = jax.random.split(key)
    x = jax.random.normal(k_x, (batch, input_size), dtype=jnp.float32)

    # --- f32 MXU path: tight check against the f32 reference --------------
    params_f32 = init_params(k_p, input_size, hidden_size, output_size,
                             matmul_dtype=jnp.float32)
    out_f32 = _run_forward(x, params_f32)
    ref = _reference(x, params_f32, hidden_size)
    assert out_f32.shape == (batch, output_size)
    assert jnp.allclose(out_f32, ref, atol=1e-4, rtol=1e-4), float(
        jnp.max(jnp.abs(out_f32 - ref)))

    # --- bf16 MXU path (production config): loose check vs f32 reference --
    params_bf16 = init_params(k_p, input_size, hidden_size, output_size,
                              matmul_dtype=jnp.bfloat16)
    out_bf16 = _run_forward(x, params_bf16)
    assert out_bf16.shape == (batch, output_size)
    assert jnp.allclose(out_bf16, ref, atol=3e-2, rtol=3e-2), float(
        jnp.max(jnp.abs(out_bf16 - ref)))

    print("KERNEL_OK")
</pallas_src>

<mosaic_0001>
module attributes {stable_mosaic.version = 11 : i64} {
  func.func @_mlp_kernel(%arg0: i32, %arg1: memref<8x16xf32, #tpu.memory_space<vmem>>, %arg2: memref<16x128xf32, #tpu.memory_space<vmem>>, %arg3: memref<1x128xf32, #tpu.memory_space<vmem>>, %arg4: memref<128x128xf32, #tpu.memory_space<vmem>>, %arg5: memref<1x128xf32, #tpu.memory_space<vmem>>, %arg6: memref<128x4xf32, #tpu.memory_space<vmem>>, %arg7: memref<1x4xf32, #tpu.memory_space<vmem>>, %arg8: memref<8x4xf32, #tpu.memory_space<vmem>>) attributes {dimension_semantics = [#tpu.dimension_semantics<parallel>], iteration_bounds = array<i64: 1>, scalar_prefetch = 0 : i64, scratch_operands = 0 : i64, tpu.core_type = #tpu.core_type<tc>, window_params = [{transform_indices = @transform_0, window_bounds = array<i64: 8, 16>}, {pipeline_mode = #tpu.pipeline_mode<synchronous>, transform_indices = @transform_1, window_bounds = array<i64: 16, 128>}, {pipeline_mode = #tpu.pipeline_mode<synchronous>, transform_indices = @transform_2, window_bounds = array<i64: 1, 128>}, {pipeline_mode = #tpu.pipeline_mode<synchronous>, transform_indices = @transform_3, window_bounds = array<i64: 128, 128>}, {pipeline_mode = #tpu.pipeline_mode<synchronous>, transform_indices = @transform_4, window_bounds = array<i64: 1, 128>}, {pipeline_mode = #tpu.pipeline_mode<synchronous>, transform_indices = @transform_5, window_bounds = array<i64: 128, 4>}, {pipeline_mode = #tpu.pipeline_mode<synchronous>, transform_indices = @transform_6, window_bounds = array<i64: 1, 4>}, {transform_indices = @transform_7, window_bounds = array<i64: 8, 4>}]} {
    %c0 = arith.constant 0 : index
    %c0_0 = arith.constant 0 : index
    %0 = vector.load %arg1[%c0, %c0_0] : memref<8x16xf32, #tpu.memory_space<vmem>>, vector<8x16xf32>
    %c0_1 = arith.constant 0 : index
    %c0_2 = arith.constant 0 : index
    %1 = vector.load %arg2[%c0_1, %c0_2] : memref<16x128xf32, #tpu.memory_space<vmem>>, vector<16x128xf32>
    %cst = arith.constant dense<0.000000e+00> : vector<8x128xf32>
    %2 = tpu.matmul %0, %1, %cst {dimension_numbers = #tpu.dot_dimension_numbers<[1], [0], [0], [1], [0, 0, 1, 1], [], []>} : vector<8x16xf32>, vector<16x128xf32>, vector<8x128xf32> -> vector<8x128xf32>
    %c0_3 = arith.constant 0 : index
    %c0_4 = arith.constant 0 : index
    %3 = vector.load %arg3[%c0_3, %c0_4] : memref<1x128xf32, #tpu.memory_space<vmem>>, vector<1x128xf32>
    %4 = vector.broadcast %3 : vector<1x128xf32> to vector<8x128xf32>
    %5 = arith.addf %2, %4 : vector<8x128xf32>
    %cst_5 = arith.constant 0.000000e+00 : f32
    %6 = vector.broadcast %cst_5 : f32 to vector<8x128xf32>
    %7 = arith.maximumf %5, %6 : vector<8x128xf32>
    %c0_6 = arith.constant 0 : index
    %c0_7 = arith.constant 0 : index
    %8 = vector.load %arg4[%c0_6, %c0_7] : memref<128x128xf32, #tpu.memory_space<vmem>>, vector<128x128xf32>
    %cst_8 = arith.constant dense<0.000000e+00> : vector<8x128xf32>
    %9 = tpu.matmul %7, %8, %cst_8 {dimension_numbers = #tpu.dot_dimension_numbers<[1], [0], [0], [1], [0, 0, 1, 1], [], []>} : vector<8x128xf32>, vector<128x128xf32>, vector<8x128xf32> -> vector<8x128xf32>
    %c0_9 = arith.constant 0 : index
    %c0_10 = arith.constant 0 : index
    %10 = vector.load %arg5[%c0_9, %c0_10] : memref<1x128xf32, #tpu.memory_space<vmem>>, vector<1x128xf32>
    %11 = vector.broadcast %10 : vector<1x128xf32> to vector<8x128xf32>
    %12 = arith.addf %9, %11 : vector<8x128xf32>
    %cst_11 = arith.constant 0.000000e+00 : f32
    %13 = vector.broadcast %cst_11 : f32 to vector<8x128xf32>
    %14 = arith.maximumf %12, %13 : vector<8x128xf32>
    %c0_12 = arith.constant 0 : index
    %c0_13 = arith.constant 0 : index
    %15 = vector.load %arg6[%c0_12, %c0_13] : memref<128x4xf32, #tpu.memory_space<vmem>>, vector<128x4xf32>
    %cst_14 = arith.constant dense<0.000000e+00> : vector<8x4xf32>
    %16 = tpu.matmul %14, %15, %cst_14 {dimension_numbers = #tpu.dot_dimension_numbers<[1], [0], [0], [1], [0, 0, 1, 1], [], []>} : vector<8x128xf32>, vector<128x4xf32>, vector<8x4xf32> -> vector<8x4xf32>
    %c0_15 = arith.constant 0 : index
    %c0_16 = arith.constant 0 : index
    %17 = vector.load %arg7[%c0_15, %c0_16] : memref<1x4xf32, #tpu.memory_space<vmem>>, vector<1x4xf32>
    %18 = vector.broadcast %17 : vector<1x4xf32> to vector<8x4xf32>
    %19 = arith.addf %16, %18 : vector<8x4xf32>
    %c0_17 = arith.constant 0 : index
    %c0_18 = arith.constant 0 : index
    %20 = vector.load %arg8[%c0_17, %c0_18] : memref<8x4xf32, #tpu.memory_space<vmem>>, vector<8x4xf32>
    tpu.vector_store %arg8[%c0_17, %c0_18], %19 {strides = array<i32>} : memref<8x4xf32, #tpu.memory_space<vmem>>, vector<8x4xf32>,
    return
  }
  func.func @transform_0(%arg0: i32) -> (i32, i32) {
    %c0_i32 = arith.constant 0 : i32
    %c0_i32_0 = arith.constant 0 : i32
    return %arg0, %c0_i32 : i32, i32
  }
  func.func @transform_1(%arg0: i32) -> (i32, i32) {
    %c0_i32 = arith.constant 0 : i32
    %c0_i32_0 = arith.constant 0 : i32
    %c0_i32_1 = arith.constant 0 : i32
    return %c0_i32, %c0_i32_0 : i32, i32
  }
  func.func @transform_2(%arg0: i32) -> (i32, i32) {
    %c0_i32 = arith.constant 0 : i32
    %c0_i32_0 = arith.constant 0 : i32
    %c0_i32_1 = arith.constant 0 : i32
    return %c0_i32, %c0_i32_0 : i32, i32
  }
  func.func @transform_3(%arg0: i32) -> (i32, i32) {
    %c0_i32 = arith.constant 0 : i32
    %c0_i32_0 = arith.constant 0 : i32
    %c0_i32_1 = arith.constant 0 : i32
    return %c0_i32, %c0_i32_0 : i32, i32
  }
  func.func @transform_4(%arg0: i32) -> (i32, i32) {
    %c0_i32 = arith.constant 0 : i32
    %c0_i32_0 = arith.constant 0 : i32
    %c0_i32_1 = arith.constant 0 : i32
    return %c0_i32, %c0_i32_0 : i32, i32
  }
  func.func @transform_5(%arg0: i32) -> (i32, i32) {
    %c0_i32 = arith.constant 0 : i32
    %c0_i32_0 = arith.constant 0 : i32
    %c0_i32_1 = arith.constant 0 : i32
    return %c0_i32, %c0_i32_0 : i32, i32
  }
  func.func @transform_6(%arg0: i32) -> (i32, i32) {
    %c0_i32 = arith.constant 0 : i32
    %c0_i32_0 = arith.constant 0 : i32
    %c0_i32_1 = arith.constant 0 : i32
    return %c0_i32, %c0_i32_0 : i32, i32
  }
  func.func @transform_7(%arg0: i32) -> (i32, i32) {
    %c0_i32 = arith.constant 0 : i32
    %c0_i32_0 = arith.constant 0 : i32
    return %arg0, %c0_i32 : i32, i32
  }
}

module attributes {stable_mosaic.version = 11 : i64} {
  func.func @_mlp_kernel(%arg0: i32, %arg1: memref<8x16xf32, #tpu.memory_space<vmem>>, %arg2: memref<16x128xf32, #tpu.memory_space<vmem>>, %arg3: memref<1x128xf32, #tpu.memory_space<vmem>>, %arg4: memref<128x128xf32, #tpu.memory_space<vmem>>, %arg5: memref<1x128xf32, #tpu.memory_space<vmem>>, %arg6: memref<128x4xf32, #tpu.memory_space<vmem>>, %arg7: memref<1x4xf32, #tpu.memory_space<vmem>>, %arg8: memref<8x4xf32, #tpu.memory_space<vmem>>) attributes {dimension_semantics = [#tpu.dimension_semantics<parallel>], iteration_bounds = array<i64: 1>, scalar_prefetch = 0 : i64, scratch_operands = 0 : i64, tpu.core_type = #tpu.core_type<tc>, window_params = [{transform_indices = @transform_0, window_bounds = array<i64: 8, 16>}, {pipeline_mode = #tpu.pipeline_mode<synchronous>, transform_indices = @transform_1, window_bounds = array<i64: 16, 128>}, {pipeline_mode = #tpu.pipeline_mode<synchronous>, transform_indices = @transform_2, window_bounds = array<i64: 1, 128>}, {pipeline_mode = #tpu.pipeline_mode<synchronous>, transform_indices = @transform_3, window_bounds = array<i64: 128, 128>}, {pipeline_mode = #tpu.pipeline_mode<synchronous>, transform_indices = @transform_4, window_bounds = array<i64: 1, 128>}, {pipeline_mode = #tpu.pipeline_mode<synchronous>, transform_indices = @transform_5, window_bounds = array<i64: 128, 4>}, {pipeline_mode = #tpu.pipeline_mode<synchronous>, transform_indices = @transform_6, window_bounds = array<i64: 1, 4>}, {transform_indices = @transform_7, window_bounds = array<i64: 8, 4>}]} {
    %c0 = arith.constant 0 : index
    %c0_0 = arith.constant 0 : index
    %0 = vector.load %arg1[%c0, %c0_0] : memref<8x16xf32, #tpu.memory_space<vmem>>, vector<8x16xf32>
    %c0_1 = arith.constant 0 : index
    %c0_2 = arith.constant 0 : index
    %1 = vector.load %arg2[%c0_1, %c0_2] : memref<16x128xf32, #tpu.memory_space<vmem>>, vector<16x128xf32>
    %cst = arith.constant dense<0.000000e+00> : vector<8x128xf32>
    %2 = tpu.matmul %0, %1, %cst {dimension_numbers = #tpu.dot_dimension_numbers<[1], [0], [0], [1], [0, 0, 1, 1], [], []>} : vector<8x16xf32>, vector<16x128xf32>, vector<8x128xf32> -> vector<8x128xf32>
    %c0_3 = arith.constant 0 : index
    %c0_4 = arith.constant 0 : index
    %3 = vector.load %arg3[%c0_3, %c0_4] : memref<1x128xf32, #tpu.memory_space<vmem>>, vector<1x128xf32>
    %4 = vector.broadcast %3 : vector<1x128xf32> to vector<8x128xf32>
    %5 = arith.addf %2, %4 : vector<8x128xf32>
    %cst_5 = arith.constant 0.000000e+00 : f32
    %6 = vector.broadcast %cst_5 : f32 to vector<8x128xf32>
    %7 = arith.maximumf %5, %6 : vector<8x128xf32>
    %c0_6 = arith.constant 0 : index
    %c0_7 = arith.constant 0 : index
    %8 = vector.load %arg4[%c0_6, %c0_7] : memref<128x128xf32, #tpu.memory_space<vmem>>, vector<128x128xf32>
    %cst_8 = arith.constant dense<0.000000e+00> : vector<8x128xf32>
    %9 = tpu.matmul %7, %8, %cst_8 {dimension_numbers = #tpu.dot_dimension_numbers<[1], [0], [0], [1], [0, 0, 1, 1], [], []>} : vector<8x128xf32>, vector<128x128xf32>, vector<8x128xf32> -> vector<8x128xf32>
    %c0_9 = arith.constant 0 : index
    %c0_10 = arith.constant 0 : index
    %10 = vector.load %arg5[%c0_9, %c0_10] : memref<1x128xf32, #tpu.memory_space<vmem>>, vector<1x128xf32>
    %11 = vector.broadcast %10 : vector<1x128xf32> to vector<8x128xf32>
    %12 = arith.addf %9, %11 : vector<8x128xf32>
    %cst_11 = arith.constant 0.000000e+00 : f32
    %13 = vector.broadcast %cst_11 : f32 to vector<8x128xf32>
    %14 = arith.maximumf %12, %13 : vector<8x128xf32>
    %c0_12 = arith.constant 0 : index
    %c0_13 = arith.constant 0 : index
    %15 = vector.load %arg6[%c0_12, %c0_13] : memref<128x4xf32, #tpu.memory_space<vmem>>, vector<128x4xf32>
    %cst_14 = arith.constant dense<0.000000e+00> : vector<8x4xf32>
    %16 = tpu.matmul %14, %15, %cst_14 {dimension_numbers = #tpu.dot_dimension_numbers<[1], [0], [0], [1], [0, 0, 1, 1], [], []>} : vector<8x128xf32>, vector<128x4xf32>, vector<8x4xf32> -> vector<8x4xf32>
    %c0_15 = arith.constant 0 : index
    %c0_16 = arith.constant 0 : index
    %17 = vector.load %arg7[%c0_15, %c0_16] : memref<1x4xf32, #tpu.memory_space<vmem>>, vector<1x4xf32>
    %18 = vector.broadcast %17 : vector<1x4xf32> to vector<8x4xf32>
    %19 = arith.addf %16, %18 : vector<8x4xf32>
    %c0_17 = arith.constant 0 : index
    %c0_18 = arith.constant 0 : index
    %20 = vector.load %arg8[%c0_17, %c0_18] : memref<8x4xf32, #tpu.memory_space<vmem>>, vector<8x4xf32>
    tpu.vector_store %arg8[%c0_17, %c0_18], %19 {strides = array<i32>} : memref<8x4xf32, #tpu.memory_space<vmem>>, vector<8x4xf32>,
    return
  }
  func.func @transform_0(%arg0: i32) -> (i32, i32) {
    %c0_i32 = arith.constant 0 : i32
    %c0_i32_0 = arith.constant 0 : i32
    return %arg0, %c0_i32 : i32, i32
  }
  func.func @transform_1(%arg0: i32) -> (i32, i32) {
    %c0_i32 = arith.constant 0 : i32
    %c0_i32_0 = arith.constant 0 : i32
    %c0_i32_1 = arith.constant 0 : i32
    return %c0_i32, %c0_i32_0 : i32, i32
  }
  func.func @transform_2(%arg0: i32) -> (i32, i32) {
    %c0_i32 = arith.constant 0 : i32
    %c0_i32_0 = arith.constant 0 : i32
    %c0_i32_1 = arith.constant 0 : i32
    return %c0_i32, %c0_i32_0 : i32, i32
  }
  func.func @transform_3(%arg0: i32) -> (i32, i32) {
    %c0_i32 = arith.constant 0 : i32
    %c0_i32_0 = arith.constant 0 : i32
    %c0_i32_1 = arith.constant 0 : i32
    return %c0_i32, %c0_i32_0 : i32, i32
  }
  func.func @transform_4(%arg0: i32) -> (i32, i32) {
    %c0_i32 = arith.constant 0 : i32
    %c0_i32_0 = arith.constant 0 : i32
    %c0_i32_1 = arith.constant 0 : i32
    return %c0_i32, %c0_i32_0 : i32, i32
  }
  func.func @transform_5(%arg0: i32) -> (i32, i32) {
    %c0_i32 = arith.constant 0 : i32
    %c0_i32_0 = arith.constant 0 : i32
    %c0_i32_1 = arith.constant 0 : i32
    return %c0_i32, %c0_i32_0 : i32, i32
  }
  func.func @transform_6(%arg0: i32) -> (i32, i32) {
    %c0_i32 = arith.constant 0 : i32
    %c0_i32_0 = arith.constant 0 : i32
    %c0_i32_1 = arith.constant 0 : i32
    return %c0_i32, %c0_i32_0 : i32, i32
  }
  func.func @transform_7(%arg0: i32) -> (i32, i32) {
    %c0_i32 = arith.constant 0 : i32
    %c0_i32_0 = arith.constant 0 : i32
    return %arg0, %c0_i32 : i32, i32
  }
}

</mosaic_0001>

<bundles_post_ra>
// kernel: poker_agent_forward.1
= control target key start
LH: loop header
LB: loop body
LE: loop exit
PB: predicated region body
PF: predicated region fallthrough
CT: control target
= control target key end

     0   :  { %12 = vsyncpa [#allocation3], 0  ;;  %s514_s24 = smov [#allocation2]   ;;  %s704_s0 = inlined_call_operand.hbm [shape: f32[8,16], index: 0, kind: input, shape index: {}]   ;;  %s705_s1 = inlined_call_operand.vmem [shape: f32[16,128], index: 1, kind: input, shape index: {}]   ;;  %s706_s2 = inlined_call_operand.vmem [shape: f32[1,128], index: 2, kind: input, shape index: {}]   ;;  %s707_s3 = inlined_call_operand.vmem [shape: f32[128,128], index: 3, kind: input, shape index: {}]   ;;  %s708_s4 = inlined_call_operand.vmem [shape: f32[1,128], index: 4, kind: input, shape index: {}]   ;;  %s709_s5 = inlined_call_operand.vmem [shape: f32[128,4], index: 5, kind: input, shape index: {}]   ;;  %s710_s6 = inlined_call_operand.vmem [shape: f32[1,4], index: 6, kind: input, shape index: {}]   ;;  %s711_s7 = inlined_call_operand.vmem [shape: f32[8,4], index: 7, kind: output, shape index: {}]  }
   0x1   :  { %s19_s25 = sshll.u32 %s514_s24, 4  ;;  %s490_s28 = scalar_lea.hbm %s704_s0, 128  ;;  %s20_s25 = int_to_ptr.vmem [resolvable:$true] %s19_s25 }
   0x2   :  { %p491_p0 = scmp.ne.s32.totalorder %s704_s0, %s490_s28  ;;  %p494_p1 = scmp.lt.u32.totalorder %s490_s28, %s704_s0 }
   0x4   :  { %p496_p2 = pnand %p494_p1, %p491_p0 }
   0x6   :  { %499 = shalt.err (!%p496_p2)
}
   0x7   :  { %s500_s10 = scalar_lea.vmem %s20_s25, 128  ;;  %p505_p4 = scmp.lt.s32.totalorder %s20_s25, %s20_s25 }
   0x8   :  { %p501_p3 = scmp.ne.s32.totalorder %s20_s25, %s500_s10  ;;  %p506_p5 = scmp.lt.s32.totalorder %s500_s10, %s500_s10 }
   0xa   :  { %p507_p6 = por %p506_p5, %p505_p4 }
   0xc   :  { %p508_p7 = pnand %p507_p6, %p501_p3 }
   0xe   :  { %511 = shalt.err (!%p508_p7)
}
   0xf   :  { %22 = dma.hbm_to_vmem [thread:$0]  %s704_s0, 128, %s20_s25, [#allocation3]  }
  0x10   :  { %512 = dma.done.wait [#allocation3], 128  }
  0x11   :  { %513 = vsyncadd [#allocation3], 4294967168  ;;  %v515_v0 = vmov 0.0|0.0   ;;  %vm516_vm0 = vmmov 0   ;;  %v517_v1 = vmov 0.0   ;;  %v39_v2 = vld [vmem:[%s705_s1] sm:$0xff] }
  0x12   :  { %435 = vmatprep.subr.bf16.mxu0 %v515_v0  ;;  %362 = vmatprep.mubr.msk.f32.mxu0 %vm516_vm0, %v517_v1  ;;  %v40_v3 = vld [vmem:[%s705_s1 + $0x8] sm:$0xff]  ;;  %v123_v5 = vld [vmem:[%s707_s3] sm:$0xff]  ;;  %v125_v7 = vld [vmem:[%s707_s3 + $0x10] sm:$0xff]  ;;  %vm48_vm1 = vcmask 130048   ;;  %vm310_vm2 = vcmask 31744  }
  0x13   :  { %438 = vmatprep.subr.bf16.mxu1 %v515_v0  ;;  %397 = vmatprep.mubr.msk.f32.mxu1 %vm516_vm0, %v517_v1  ;;  %v436_v4 = vpack.c.bf16 %v40_v3, %v39_v2  ;;  %v124_v6 = vld [vmem:[%s707_s3 + $0x8] sm:$0xff]  ;;  %v126_v9 = vld [vmem:[%s707_s3 + $0x18] sm:$0xff]  ;;  %v38_v10 = vld [vmem:[#allocation2] sm:$0xff] }
  0x14   :  { %v439_v8 = vpack.c.bf16 %v124_v6, %v123_v5  ;;  %v442_v11 = vpack.c.bf16 %v126_v9, %v125_v7  ;;  %v127_v12 = vld [vmem:[%s707_s3 + $0x20] sm:$0xff]  ;;  %v128_v13 = vld [vmem:[%s707_s3 + $0x28] sm:$0xff]  ;;  %v129_v15 = vld [vmem:[%s707_s3 + $0x30] sm:$0xff] }
  0x15   :  { %437 = vmatpush3.bf16.msra.mxu0 %v436_v4  ;;  %v445_v14 = vpack.c.bf16 %v128_v13, %v127_v12  ;;  %v130_v16 = vld [vmem:[%s707_s3 + $0x38] sm:$0xff]  ;;  %v131_v18 = vld [vmem:[%s707_s3 + $0x40] sm:$0xff]  ;;  %v132_v19 = vld [vmem:[%s707_s3 + $0x48] sm:$0xff] }
  0x16   :  { %440 = vmatpush3.bf16.msra.mxu1 %v439_v8  ;;  %462 = vmatprep.subr.bf16.mxu0 %v515_v0  ;;  %v448_v17 = vpack.c.bf16 %v130_v16, %v129_v15  ;;  %v451_v20 = vpack.c.bf16 %v132_v19, %v131_v18  ;;  %v133_v21 = vld [vmem:[%s707_s3 + $0x50] sm:$0xff]  ;;  %v134_v22 = vld [vmem:[%s707_s3 + $0x58] sm:$0xff]  ;;  %v135_v24 = vld [vmem:[%s707_s3 + $0x60] sm:$0xff] }
  0x17   :  { %441 = vmatprep.subr.bf16.mxu1 %v515_v0  ;;  %v454_v23 = vpack.c.bf16 %v134_v22, %v133_v21  ;;  %v136_v25 = vld [vmem:[%s707_s3 + $0x68] sm:$0xff]  ;;  %v137_v27 = vld [vmem:[%s707_s3 + $0x70] sm:$0xff]  ;;  %v138_v28 = vld [vmem:[%s707_s3 + $0x78] sm:$0xff] }
  0x18   :  { %363 = vmatmul.mubr.msk.f32.vlgmr.msra.gmra.mrb[0].mxu0 %vm48_vm1, %v38_v10  ;;  %v457_v26 = vpack.c.bf16 %v136_v25, %v135_v24  ;;  %v460_v29 = vpack.c.bf16 %v138_v28, %v137_v27  ;;  %v217_v30 = vld [vmem:[%s709_s5] sm:$0xff]  ;;  %v218_v31 = vld [vmem:[%s709_s5 + $0x8] sm:$0xff]  ;;  %v219_v32 = vld [vmem:[%s709_s5 + $0x10] sm:$0xff] }
  0x19   :  { %432 = vmatprep.mubr.msk.f32.mxu0 %vm516_vm0, %v517_v1  ;;  %v463_v33 = vpack.c.bf16 %v218_v31, %v217_v30  ;;  %v220_v34 = vld [vmem:[%s709_s5 + $0x18] sm:$0xff]  ;;  %v221_v36 = vld [vmem:[%s709_s5 + $0x20] sm:$0xff]  ;;  %v222_v37 = vld [vmem:[%s709_s5 + $0x28] sm:$0xff] }
  0x1a   :  { %443 = vmatpush3.bf16.msra.mxu1 %v442_v11  ;;  %v466_v35 = vpack.c.bf16 %v220_v34, %v219_v32  ;;  %v469_v38 = vpack.c.bf16 %v222_v37, %v221_v36  ;;  %v223_v39 = vld [vmem:[%s709_s5 + $0x30] sm:$0xff]  ;;  %v224_v40 = vld [vmem:[%s709_s5 + $0x38] sm:$0xff]  ;;  %v225_v42 = vld [vmem:[%s709_s5 + $0x40] sm:$0xff] }
  0x1b   :  { %444 = vmatprep.subr.bf16.mxu1 %v515_v0  ;;  %464 = vmatpush3.bf16.msra.mxu0 %v463_v33  ;;  %v472_v41 = vpack.c.bf16 %v224_v40, %v223_v39  ;;  %v226_v43 = vld [vmem:[%s709_s5 + $0x48] sm:$0xff]  ;;  %v227_v45 = vld [vmem:[%s709_s5 + $0x50] sm:$0xff]  ;;  %v228_v46 = vld [vmem:[%s709_s5 + $0x58] sm:$0xff] }
  0x1c   :  { %465 = vmatprep.subr.bf16.mxu0 %v515_v0  ;;  %v475_v44 = vpack.c.bf16 %v226_v43, %v225_v42  ;;  %v478_v47 = vpack.c.bf16 %v228_v46, %v227_v45  ;;  %v229_v48 = vld [vmem:[%s709_s5 + $0x60] sm:$0xff]  ;;  %v230_v49 = vld [vmem:[%s709_s5 + $0x68] sm:$0xff]  ;;  %v231_v56 = vld [vmem:[%s709_s5 + $0x70] sm:$0xff] }
  0x1d   :  { %v481_v50 = vpack.c.bf16 %v230_v49, %v229_v48  ;;  %v317_v51 = vld [vmem:[%s706_s2] ss:$0 sm:$0xff]  ;;  %v232_v57 = vld [vmem:[%s709_s5 + $0x78] sm:$0xff] }
  0x1e   :  { %446 = vmatpush3.bf16.msra.mxu1 %v445_v14  ;;  %v484_v58 = vpack.c.bf16 %v232_v57, %v231_v56  ;;  %v319_v59 = vld [vmem:[%s708_s4] ss:$0 sm:$0xff] }
  0x1f   :  { %447 = vmatprep.subr.bf16.mxu1 %v515_v0  ;;  %467 = vmatpush3.bf16.msra.mxu0 %v466_v35 }
  0x20   :  { %468 = vmatprep.subr.bf16.mxu0 %v515_v0 }
  0x22   :  { %449 = vmatpush3.bf16.msra.mxu1 %v448_v17 }
  0x23   :  { %450 = vmatprep.subr.bf16.mxu1 %v515_v0  ;;  %470 = vmatpush3.bf16.msra.mxu0 %v469_v38 }
  0x24   :  { %471 = vmatprep.subr.bf16.mxu0 %v515_v0 }
  0x26   :  { %452 = vmatpush3.bf16.msra.mxu1 %v451_v20 }
  0x27   :  { %453 = vmatprep.subr.bf16.mxu1 %v515_v0  ;;  %473 = vmatpush3.bf16.msra.mxu0 %v472_v41 }
  0x28   :  { %474 = vmatprep.subr.bf16.mxu0 %v515_v0 }
  0x2a   :  { %455 = vmatpush3.bf16.msra.mxu1 %v454_v23 }
  0x2b   :  { %456 = vmatprep.subr.bf16.mxu1 %v515_v0  ;;  %476 = vmatpush3.bf16.msra.mxu0 %v475_v44 }
  0x2c   :  { %477 = vmatprep.subr.bf16.mxu0 %v515_v0 }
  0x2e   :  { %458 = vmatpush3.bf16.msra.mxu1 %v457_v26 }
  0x2f   :  { %459 = vmatprep.subr.bf16.mxu1 %v515_v0  ;;  %479 = vmatpush3.bf16.msra.mxu0 %v478_v47 }
  0x30   :  { %480 = vmatprep.subr.bf16.mxu0 %v515_v0 }
  0x32   :  { %461 = vmatpush3.bf16.msra.mxu1 %v460_v29 }
  0x33   :  { %482 = vmatpush3.bf16.msra.mxu0 %v481_v50 }
  0x34   :  { %483 = vmatprep.subr.bf16.mxu0 %v515_v0  ;;  %v320_v0 = vld [vmem:[%s710_s6] ss:$0 sm:$0xff] }
  0x37   :  { %485 = vmatpush3.bf16.msra.mxu0 %v484_v58 }
  0xeb   :  { %v118_v52 = vpop.f32.mrb[0].mxu0 }
  0xec   :  { %v119_v53 = vadd.f32 %v317_v51, %v118_v52  ;;  %v364_v54 = vpop.f32.mrb[1].mxu0 }
  0xee   :  { %v122_v55 = vmax.f32 %v119_v53, 0.0 }
  0xf0   :  { %398 = vmatmul.mubr.f32.vlgmr.msra.gmra.mrb[0].mxu1 %v122_v55 }
 0x1c3   :  { %v212_v60 = vpop.f32.mrb[0].mxu1 }
 0x1c4   :  { %v213_v61 = vadd.f32 %v319_v59, %v212_v60  ;;  %v399_v62 = vpop.f32.mrb[1].mxu1 }
 0x1c6   :  { %v216_v63 = vmax.f32 %v213_v61, 0.0 }
 0x1c8   :  { %433 = vmatmul.mubr.f32.vlgmr.msra.gmra.mrb[2].mxu0 %v216_v63 }
 0x29b   :  { %v306_v1 = vpop.f32.mrb[2].mxu0 }
 0x29c   :  { %v307_v2 = vadd.f32 %v320_v0, %v306_v1  ;;  %v434_v3 = vpop.f32.mrb[3].mxu0 }
 0x29e   :  { %311 = vst.msk [vmem:[%s711_s7] sm:$0xff] %vm310_vm2, %v307_v2 }
 0x29f   :  { %316 = vsyncpa [#allocation3], 1 }

// kernel: poker_agent_forward.1
= control target key start
LH: loop header
LB: loop body
LE: loop exit
PB: predicated region body
PF: predicated region fallthrough
CT: control target
= control target key end

     0   :  { %12 = vsyncpa [#allocation3], 0  ;;  %s514_s24 = smov [#allocation2]   ;;  %s704_s0 = inlined_call_operand.hbm [shape: f32[8,16], index: 0, kind: input, shape index: {}]   ;;  %s705_s1 = inlined_call_operand.vmem [shape: f32[16,128], index: 1, kind: input, shape index: {}]   ;;  %s706_s2 = inlined_call_operand.vmem [shape: f32[1,128], index: 2, kind: input, shape index: {}]   ;;  %s707_s3 = inlined_call_operand.vmem [shape: f32[128,128], index: 3, kind: input, shape index: {}]   ;;  %s708_s4 = inlined_call_operand.vmem [shape: f32[1,128], index: 4, kind: input, shape index: {}]   ;;  %s709_s5 = inlined_call_operand.vmem [shape: f32[128,4], index: 5, kind: input, shape index: {}]   ;;  %s710_s6 = inlined_call_operand.vmem [shape: f32[1,4], index: 6, kind: input, shape index: {}]   ;;  %s711_s7 = inlined_call_operand.vmem [shape: f32[8,4], index: 7, kind: output, shape index: {}]  }
   0x1   :  { %s19_s25 = sshll.u32 %s514_s24, 4  ;;  %s490_s28 = scalar_lea.hbm %s704_s0, 128  ;;  %s20_s25 = int_to_ptr.vmem [resolvable:$true] %s19_s25 }
   0x2   :  { %p491_p0 = scmp.ne.s32.totalorder %s704_s0, %s490_s28  ;;  %p494_p1 = scmp.lt.u32.totalorder %s490_s28, %s704_s0 }
   0x4   :  { %p496_p2 = pnand %p494_p1, %p491_p0 }
   0x6   :  { %499 = shalt.err (!%p496_p2)
}
   0x7   :  { %s500_s10 = scalar_lea.vmem %s20_s25, 128  ;;  %p505_p4 = scmp.lt.s32.totalorder %s20_s25, %s20_s25 }
   0x8   :  { %p501_p3 = scmp.ne.s32.totalorder %s20_s25, %s500_s10  ;;  %p506_p5 = scmp.lt.s32.totalorder %s500_s10, %s500_s10 }
   0xa   :  { %p507_p6 = por %p506_p5, %p505_p4 }
   0xc   :  { %p508_p7 = pnand %p507_p6, %p501_p3 }
   0xe   :  { %511 = shalt.err (!%p508_p7)
}
   0xf   :  { %22 = dma.hbm_to_vmem [thread:$0]  %s704_s0, 128, %s20_s25, [#allocation3]  }
  0x10   :  { %512 = dma.done.wait [#allocation3], 128  }
  0x11   :  { %513 = vsyncadd [#allocation3], 4294967168  ;;  %v515_v0 = vmov 0.0|0.0   ;;  %vm516_vm0 = vmmov 0   ;;  %v517_v1 = vmov 0.0   ;;  %v39_v2 = vld [vmem:[%s705_s1] sm:$0xff] }
  0x12   :  { %435 = vmatprep.subr.bf16.mxu0 %v515_v0  ;;  %362 = vmatprep.mubr.msk.f32.mxu0 %vm516_vm0, %v517_v1  ;;  %v40_v3 = vld [vmem:[%s705_s1 + $0x8] sm:$0xff]  ;;  %v123_v5 = vld [vmem:[%s707_s3] sm:$0xff]  ;;  %v125_v7 = vld [vmem:[%s707_s3 + $0x10] sm:$0xff]  ;;  %vm48_vm1 = vcmask 130048   ;;  %vm310_vm2 = vcmask 31744  }
  0x13   :  { %438 = vmatprep.subr.bf16.mxu1 %v515_v0  ;;  %397 = vmatprep.mubr.msk.f32.mxu1 %vm516_vm0, %v517_v1  ;;  %v436_v4 = vpack.c.bf16 %v40_v3, %v39_v2  ;;  %v124_v6 = vld [vmem:[%s707_s3 + $0x8] sm:$0xff]  ;;  %v126_v9 = vld [vmem:[%s707_s3 + $0x18] sm:$0xff]  ;;  %v38_v10 = vld [vmem:[#allocation2] sm:$0xff] }
  0x14   :  { %v439_v8 = vpack.c.bf16 %v124_v6, %v123_v5  ;;  %v442_v11 = vpack.c.bf16 %v126_v9, %v125_v7  ;;  %v127_v12 = vld [vmem:[%s707_s3 + $0x20] sm:$0xff]  ;;  %v128_v13 = vld [vmem:[%s707_s3 + $0x28] sm:$0xff]  ;;  %v129_v15 = vld [vmem:[%s707_s3 + $0x30] sm:$0xff] }
  0x15   :  { %437 = vmatpush3.bf16.msra.mxu0 %v436_v4  ;;  %v445_v14 = vpack.c.bf16 %v128_v13, %v127_v12  ;;  %v130_v16 = vld [vmem:[%s707_s3 + $0x38] sm:$0xff]  ;;  %v131_v18 = vld [vmem:[%s707_s3 + $0x40] sm:$0xff]  ;;  %v132_v19 = vld [vmem:[%s707_s3 + $0x48] sm:$0xff] }
  0x16   :  { %440 = vmatpush3.bf16.msra.mxu1 %v439_v8  ;;  %462 = vmatprep.subr.bf16.mxu0 %v515_v0  ;;  %v448_v17 = vpack.c.bf16 %v130_v16, %v129_v15  ;;  %v451_v20 = vpack.c.bf16 %v132_v19, %v131_v18  ;;  %v133_v21 = vld [vmem:[%s707_s3 + $0x50] sm:$0xff]  ;;  %v134_v22 = vld [vmem:[%s707_s3 + $0x58] sm:$0xff]  ;;  %v135_v24 = vld [vmem:[%s707_s3 + $0x60] sm:$0xff] }
  0x17   :  { %441 = vmatprep.subr.bf16.mxu1 %v515_v0  ;;  %v454_v23 = vpack.c.bf16 %v134_v22, %v133_v21  ;;  %v136_v25 = vld [vmem:[%s707_s3 + $0x68] sm:$0xff]  ;;  %v137_v27 = vld [vmem:[%s707_s3 + $0x70] sm:$0xff]  ;;  %v138_v28 = vld [vmem:[%s707_s3 + $0x78] sm:$0xff] }
  0x18   :  { %363 = vmatmul.mubr.msk.f32.vlgmr.msra.gmra.mrb[0].mxu0 %vm48_vm1, %v38_v10  ;;  %v457_v26 = vpack.c.bf16 %v136_v25, %v135_v24  ;;  %v460_v29 = vpack.c.bf16 %v138_v28, %v137_v27  ;;  %v217_v30 = vld [vmem:[%s709_s5] sm:$0xff]  ;;  %v218_v31 = vld [vmem:[%s709_s5 + $0x8] sm:$0xff]  ;;  %v219_v32 = vld [vmem:[%s709_s5 + $0x10] sm:$0xff] }
  0x19   :  { %432 = vmatprep.mubr.msk.f32.mxu0 %vm516_vm0, %v517_v1  ;;  %v463_v33 = vpack.c.bf16 %v218_v31, %v217_v30  ;;  %v220_v34 = vld [vmem:[%s709_s5 + $0x18] sm:$0xff]  ;;  %v221_v36 = vld [vmem:[%s709_s5 + $0x20] sm:$0xff]  ;;  %v222_v37 = vld [vmem:[%s709_s5 + $0x28] sm:$0xff] }
  0x1a   :  { %443 = vmatpush3.bf16.msra.mxu1 %v442_v11  ;;  %v466_v35 = vpack.c.bf16 %v220_v34, %v219_v32  ;;  %v469_v38 = vpack.c.bf16 %v222_v37, %v221_v36  ;;  %v223_v39 = vld [vmem:[%s709_s5 + $0x30] sm:$0xff]  ;;  %v224_v40 = vld [vmem:[%s709_s5 + $0x38] sm:$0xff]  ;;  %v225_v42 = vld [vmem:[%s709_s5 + $0x40] sm:$0xff] }
  0x1b   :  { %444 = vmatprep.subr.bf16.mxu1 %v515_v0  ;;  %464 = vmatpush3.bf16.msra.mxu0 %v463_v33  ;;  %v472_v41 = vpack.c.bf16 %v224_v40, %v223_v39  ;;  %v226_v43 = vld [vmem:[%s709_s5 + $0x48] sm:$0xff]  ;;  %v227_v45 = vld [vmem:[%s709_s5 + $0x50] sm:$0xff]  ;;  %v228_v46 = vld [vmem:[%s709_s5 + $0x58] sm:$0xff] }
  0x1c   :  { %465 = vmatprep.subr.bf16.mxu0 %v515_v0  ;;  %v475_v44 = vpack.c.bf16 %v226_v43, %v225_v42  ;;  %v478_v47 = vpack.c.bf16 %v228_v46, %v227_v45  ;;  %v229_v48 = vld [vmem:[%s709_s5 + $0x60] sm:$0xff]  ;;  %v230_v49 = vld [vmem:[%s709_s5 + $0x68] sm:$0xff]  ;;  %v231_v56 = vld [vmem:[%s709_s5 + $0x70] sm:$0xff] }
  0x1d   :  { %v481_v50 = vpack.c.bf16 %v230_v49, %v229_v48  ;;  %v317_v51 = vld [vmem:[%s706_s2] ss:$0 sm:$0xff]  ;;  %v232_v57 = vld [vmem:[%s709_s5 + $0x78] sm:$0xff] }
  0x1e   :  { %446 = vmatpush3.bf16.msra.mxu1 %v445_v14  ;;  %v484_v58 = vpack.c.bf16 %v232_v57, %v231_v56  ;;  %v319_v59 = vld [vmem:[%s708_s4] ss:$0 sm:$0xff] }
  0x1f   :  { %447 = vmatprep.subr.bf16.mxu1 %v515_v0  ;;  %467 = vmatpush3.bf16.msra.mxu0 %v466_v35 }
  0x20   :  { %468 = vmatprep.subr.bf16.mxu0 %v515_v0 }
  0x22   :  { %449 = vmatpush3.bf16.msra.mxu1 %v448_v17 }
  0x23   :  { %450 = vmatprep.subr.bf16.mxu1 %v515_v0  ;;  %470 = vmatpush3.bf16.msra.mxu0 %v469_v38 }
  0x24   :  { %471 = vmatprep.subr.bf16.mxu0 %v515_v0 }
  0x26   :  { %452 = vmatpush3.bf16.msra.mxu1 %v451_v20 }
  0x27   :  { %453 = vmatprep.subr.bf16.mxu1 %v515_v0  ;;  %473 = vmatpush3.bf16.msra.mxu0 %v472_v41 }
  0x28   :  { %474 = vmatprep.subr.bf16.mxu0 %v515_v0 }
  0x2a   :  { %455 = vmatpush3.bf16.msra.mxu1 %v454_v23 }
  0x2b   :  { %456 = vmatprep.subr.bf16.mxu1 %v515_v0  ;;  %476 = vmatpush3.bf16.msra.mxu0 %v475_v44 }
  0x2c   :  { %477 = vmatprep.subr.bf16.mxu0 %v515_v0 }
  0x2e   :  { %458 = vmatpush3.bf16.msra.mxu1 %v457_v26 }
  0x2f   :  { %459 = vmatprep.subr.bf16.mxu1 %v515_v0  ;;  %479 = vmatpush3.bf16.msra.mxu0 %v478_v47 }
  0x30   :  { %480 = vmatprep.subr.bf16.mxu0 %v515_v0 }
  0x32   :  { %461 = vmatpush3.bf16.msra.mxu1 %v460_v29 }
  0x33   :  { %482 = vmatpush3.bf16.msra.mxu0 %v481_v50 }
  0x34   :  { %483 = vmatprep.subr.bf16.mxu0 %v515_v0  ;;  %v320_v0 = vld [vmem:[%s710_s6] ss:$0 sm:$0xff] }
  0x37   :  { %485 = vmatpush3.bf16.msra.mxu0 %v484_v58 }
  0xeb   :  { %v118_v52 = vpop.f32.mrb[0].mxu0 }
  0xec   :  { %v119_v53 = vadd.f32 %v317_v51, %v118_v52  ;;  %v364_v54 = vpop.f32.mrb[1].mxu0 }
  0xee   :  { %v122_v55 = vmax.f32 %v119_v53, 0.0 }
  0xf0   :  { %398 = vmatmul.mubr.f32.vlgmr.msra.gmra.mrb[0].mxu1 %v122_v55 }
 0x1c3   :  { %v212_v60 = vpop.f32.mrb[0].mxu1 }
 0x1c4   :  { %v213_v61 = vadd.f32 %v319_v59, %v212_v60  ;;  %v399_v62 = vpop.f32.mrb[1].mxu1 }
 0x1c6   :  { %v216_v63 = vmax.f32 %v213_v61, 0.0 }
 0x1c8   :  { %433 = vmatmul.mubr.f32.vlgmr.msra.gmra.mrb[2].mxu0 %v216_v63 }
 0x29b   :  { %v306_v1 = vpop.f32.mrb[2].mxu0 }
 0x29c   :  { %v307_v2 = vadd.f32 %v320_v0, %v306_v1  ;;  %v434_v3 = vpop.f32.mrb[3].mxu0 }
 0x29e   :  { %311 = vst.msk [vmem:[%s711_s7] sm:$0xff] %vm310_vm2, %v307_v2 }
 0x29f   :  { %316 = vsyncpa [#allocation3], 1 }

</bundles_post_ra>
